<compile_context>
chip_gen: v5e
topology: v5e:2x2
jax: 0.10.0
libtpu: 0.0.40
codegen_flags: <defaults>
</compile_context>

<pallas_src>
import jax
import jax.numpy as jnp
from jax.experimental import pallas as pl
from jax.experimental.pallas import tpu as pltpu

LANES = 128
BLOCK_BYTES_TARGET = 8 * 1024 * 1024     # ~8 MiB per block
VMEM_LIMIT_BYTES = 48 * 1024 * 1024      # 4 x 8 MiB double-buffered + headroom
SPLIT_MIN_BYTES = 2 * 1024 * 1024        # split into >=2 grid steps above this


def _sublane_tile(dtype):
    """Min sublane multiple: 8 for 4-byte, 16 for 2-byte, 32 for 1-byte dtypes."""
    itemsize = jnp.dtype(dtype).itemsize
    return max(8, 8 * (4 // max(1, itemsize)))


def _round_up(a, b):
    return ((a + b - 1) // b) * b


def _gaussian_kernel(scale_ref, x_ref, o_ref):
    # scale_ref: (1,) f32 in SMEM holding -1/(2*sigma^2) (negation folded in).
    # Compute in f32 for accuracy; on v5e/v6e the kernel is HBM-bound so the
    # EUP exp is free filler.
    # TODO(synk): on v7x, a bf16 exp path would halve EUP work if a profile
    # shows the single EUP port binding before DMA for 2-byte inputs.
    x = x_ref[...].astype(jnp.float32)
    o_ref[...] = jnp.exp((x * x) * scale_ref[0]).astype(o_ref.dtype)


def _gaussian_2d(x2d, scale, block_rows=None):
    """Run the Pallas kernel on a lane-dense (rows, 128) slab (no padding)."""
    rows, lanes = x2d.shape
    assert lanes == LANES
    dtype = x2d.dtype
    itemsize = jnp.dtype(dtype).itemsize
    tile = _sublane_tile(dtype)

    if block_rows is None:
        block_rows = BLOCK_BYTES_TARGET // (LANES * itemsize)
    block_rows = _round_up(block_rows, tile)

    # Guarantee >= 2 grid steps on tensors big enough to benefit (v7x megacore).
    if rows * LANES * itemsize >= SPLIT_MIN_BYTES:
        block_rows = min(block_rows, _round_up(pl.cdiv(rows, 2), tile))

    # Small tensors: one block spanning the full (possibly unaligned) row dim.
    if rows <= block_rows:
        block_rows = rows

    grid = (pl.cdiv(rows, block_rows),)

    return pl.pallas_call(
        _gaussian_kernel,
        out_shape=jax.ShapeDtypeStruct((rows, LANES), dtype),
        grid_spec=pltpu.PrefetchScalarGridSpec(
            num_scalar_prefetch=0,
            grid=grid,
            in_specs=[
                pl.BlockSpec(memory_space=pltpu.MemorySpace.SMEM),   # sigma scale
                pl.BlockSpec((block_rows, LANES), lambda i: (i, 0)),
            ],
            out_specs=pl.BlockSpec((block_rows, LANES), lambda i: (i, 0)),
        ),
        compiler_params=pltpu.CompilerParams(
            dimension_semantics=("parallel",),
            vmem_limit_bytes=VMEM_LIMIT_BYTES,
        ),
    )(scale, x2d)


def gaussian(x, sigma: float = 1.0, *, block_rows=None):
    """exp(-x**2 / (2*sigma**2)) — same semantics as the PyTorch Gaussian module."""
    orig_shape = x.shape
    orig_dtype = x.dtype
    n = x.size

    variance = float(sigma) ** 2
    denom = 2.0 * variance
    # sigma -> 0: scale -> -inf so exp -> 0, matching the torch math (no div-by-0 crash).
    neg_inv = (-1.0 / denom) if denom > 0.0 else -float("inf")
    scale = jnp.asarray([neg_inv], dtype=jnp.float32)

    if n == 0:
        return x

    flat = x.reshape(-1)                      # metadata-only for contiguous inputs
    bulk_rows = n // LANES
    bulk_n = bulk_rows * LANES

    if bulk_n == n:
        # Lane-aligned: fully copy-free; a partial final grid block covers rows
        # that are not a multiple of the sublane tile (no pad / un-pad passes).
        out2d = _gaussian_2d(flat.reshape(bulk_rows, LANES), scale, block_rows)
        return out2d.reshape(orig_shape)

    # Ragged: run the lane-aligned bulk through the kernel, the <128-element
    # tail with plain jnp (avoids full-array pad + un-pad HBM passes).
    pieces = []
    if bulk_rows > 0:
        out2d = _gaussian_2d(flat[:bulk_n].reshape(bulk_rows, LANES), scale, block_rows)
        pieces.append(out2d.reshape(-1))
    tail = flat[bulk_n:].astype(jnp.float32)
    pieces.append(jnp.exp((tail * tail) * scale[0]).astype(orig_dtype))
    return jnp.concatenate(pieces).reshape(orig_shape)


if __name__ == "__main__":
    def ref_fn(x, s, dtype):
        xf = x.astype(jnp.float32)
        return jnp.exp(-(xf ** 2) / (2.0 * float(s) ** 2)).astype(dtype)

    key = jax.random.PRNGKey(0)
    k1, k2, k3, k4, k5 = jax.random.split(key, 5)

    # Shape implied by the module spec: lane-aligned, single block, copy-free.
    x1 = jax.random.normal(k1, (2, 4, 16, 16), dtype=jnp.float32)
    o1 = jax.block_until_ready(gaussian(x1, sigma=1.0))
    assert o1.shape == x1.shape and o1.dtype == x1.dtype
    assert jnp.allclose(o1, ref_fn(x1, 1.0, x1.dtype), atol=1e-6, rtol=1e-6)

    # Ragged size (n % 128 != 0): bulk kernel + tiny jnp tail.
    x2 = jax.random.normal(k2, (3, 5, 7, 11), dtype=jnp.float32)
    o2 = jax.block_until_ready(gaussian(x2, sigma=0.5))
    assert o2.shape == x2.shape and o2.dtype == x2.dtype
    assert jnp.allclose(o2, ref_fn(x2, 0.5, x2.dtype), atol=1e-6, rtol=1e-6)

    # Lane-aligned but rows not a multiple of the sublane tile (full-dim block).
    x3 = jax.random.normal(k3, (10, 128), dtype=jnp.float32)
    o3 = jax.block_until_ready(gaussian(x3, sigma=2.0))
    assert jnp.allclose(o3, ref_fn(x3, 2.0, x3.dtype), atol=1e-6, rtol=1e-6)

    # Large enough to split into 2 grid steps with a partial final block.
    x4 = jax.random.normal(k4, (4100, 128), dtype=jnp.float32)
    o4 = jax.block_until_ready(gaussian(x4, sigma=1.0))
    assert jnp.allclose(o4, ref_fn(x4, 1.0, x4.dtype), atol=1e-6, rtol=1e-6)

    # bf16 input exercises the dtype-aware (16,128) sublane tiling.
    x5 = jax.random.normal(k5, (4, 16, 32), dtype=jnp.bfloat16)
    o5 = jax.block_until_ready(gaussian(x5, sigma=1.5))
    assert o5.dtype == jnp.bfloat16
    assert jnp.allclose(o5.astype(jnp.float32),
                        ref_fn(x5, 1.5, jnp.float32), atol=2e-2, rtol=2e-2)

    print("KERNEL_OK")
</pallas_src>

<mosaic_0001>
module attributes {stable_mosaic.version = 11 : i64} {
  func.func @_gaussian_kernel(%arg0: i32, %arg1: memref<1xf32, #tpu.memory_space<smem>>, %arg2: memref<16x128xf32, #tpu.memory_space<vmem>>, %arg3: memref<16x128xf32, #tpu.memory_space<vmem>>) attributes {dimension_semantics = [#tpu.dimension_semantics<parallel>], iteration_bounds = array<i64: 1>, scalar_prefetch = 0 : i64, scratch_operands = 0 : i64, tpu.core_type = #tpu.core_type<tc>, window_params = [{transform_indices = @transform_0, window_bounds = array<i64: 1>}, {transform_indices = @transform_1, window_bounds = array<i64: 16, 128>}, {transform_indices = @transform_2, window_bounds = array<i64: 16, 128>}]} {
    %c0 = arith.constant 0 : index
    %c0_0 = arith.constant 0 : index
    %0 = vector.load %arg2[%c0, %c0_0] : memref<16x128xf32, #tpu.memory_space<vmem>>, vector<16x128xf32>
    %1 = arith.mulf %0, %0 : vector<16x128xf32>
    %c0_1 = arith.constant 0 : index
    %2 = memref.load %arg1[%c0_1] : memref<1xf32, #tpu.memory_space<smem>>
    %3 = vector.broadcast %2 : f32 to vector<16x128xf32>
    %4 = arith.mulf %1, %3 : vector<16x128xf32>
    %5 = math.exp %4 : vector<16x128xf32>
    %c0_2 = arith.constant 0 : index
    %c0_3 = arith.constant 0 : index
    %6 = vector.load %arg3[%c0_2, %c0_3] : memref<16x128xf32, #tpu.memory_space<vmem>>, vector<16x128xf32>
    tpu.vector_store %arg3[%c0_2, %c0_3], %5 {strides = array<i32>} : memref<16x128xf32, #tpu.memory_space<vmem>>, vector<16x128xf32>,
    return
  }
  func.func @transform_0(%arg0: i32) -> i32 {
    %c0_i32 = arith.constant 0 : i32
    %c0_i32_0 = arith.constant 0 : i32
    return %c0_i32 : i32
  }
  func.func @transform_1(%arg0: i32) -> (i32, i32) {
    %c0_i32 = arith.constant 0 : i32
    %c0_i32_0 = arith.constant 0 : i32
    return %arg0, %c0_i32 : i32, i32
  }
  func.func @transform_2(%arg0: i32) -> (i32, i32) {
    %c0_i32 = arith.constant 0 : i32
    %c0_i32_0 = arith.constant 0 : i32
    return %arg0, %c0_i32 : i32, i32
  }
}

</mosaic_0001>

<bundles_post_ra>
// kernel: tpu_custom_call.1
= control target key start
LH: loop header
LB: loop body
LE: loop exit
PB: predicated region body
PF: predicated region fallthrough
CT: control target
= control target key end

     0   :  { %8 = vsyncpa [#allocation4], 0  ;;  %s150_s0 = inlined_call_operand.<no memory space> [shape: f32[1], index: 0, kind: input, shape index: {}]   ;;  %s151_s1 = inlined_call_operand.hbm [shape: f32[16,128], index: 1, kind: input, shape index: {}]   ;;  %s152_s2 = inlined_call_operand.hbm [shape: f32[16,128], index: 2, kind: output, shape index: {}]  }
   0x1   :  { %9 = vsyncpa [#allocation5], 0  ;;  %s16_s11 = sshll.u32 %s151_s1, 4  ;;  %s122_s12 = smov [#allocation3]   ;;  %s17_s11 = int_to_ptr.hbm [resolvable:$true] %s16_s11 }
   0x2   :  { %s18_s13 = sshll.u32 %s122_s12, 4  ;;  %s123_s14 = smov 128   ;;  %s19_s13 = int_to_ptr.vmem [resolvable:$true] %s18_s13 }
   0x3   :  { %s124_s15 = smov 8  }
   0x4   :  { %24 = dma.hbm_to_vmem [thread:$0]  %s17_s11, 256, %s19_s13, [#allocation4], %s123_s14, %s123_s14, %s124_s15  }
   0x5   :  { %118 = dma.done.wait [#allocation4], 256  }
   0x6   :  { %119 = vsyncadd [#allocation4], 4294967040  ;;  %v29_v0 = vld [vmem:[#allocation3] sm:$0xff]  ;;  %v34_v1 = vstv %s150_s0  ;;  %v30_v2 = vld [vmem:[#allocation3 + $0x8] sm:$0xff]  ;;  %s125_s1 = smov [#allocation6]   ;;  %s49_s21 = sshll.u32 %s152_s2, 4  ;;  %s50_s21 = int_to_ptr.hbm [resolvable:$true] %s49_s21 }
   0x7   :  { %v31_v3 = vmul.f32 %v29_v0, %v29_v0  ;;  %v32_v4 = vmul.f32 %v30_v2, %v30_v2  ;;  %s47_s18 = sshll.u32 %s125_s1, 4  ;;  %s48_s18 = int_to_ptr.vmem [resolvable:$true] %s47_s18 }
   0x9   :  { %v35_v5 = vmul.f32 %v34_v1, %v31_v3  ;;  %v36_v6 = vmul.f32 %v34_v1, %v32_v4 }
   0xb   :  { %v37_v7 = vmul.f32 1.442695, %v35_v5  ;;  %v39_v8 = vmul.f32 1.442695, %v36_v6 }
   0xd   :  { %66 = vpow2.f32 %v37_v7 }
   0xe   :  { %68 = vpow2.f32 %v39_v8 }
  0x13   :  { %v67_v9 = vpop.eup %66 }
  0x14   :  { %v69_v10 = vpop.eup %68  ;;  %41 = vst [vmem:[#allocation6] sm:$0xff] %v67_v9 }
  0x15   :  { %42 = vst [vmem:[#allocation6 + $0x8] sm:$0xff] %v69_v10 }
  0x16   :  { %55 = dma.vmem_to_hbm [thread:$0]  %s48_s18, 256, %s50_s21, [#allocation5], %s123_s14, %s123_s14, %s124_s15  }
  0x17   :  { %120 = dma.done.wait [#allocation5], 256  }
  0x18   :  { %121 = vsyncadd [#allocation5], 4294967040 }
  0x19   :  { %60 = vsyncpa [#allocation4], 1 }
  0x1a   :  { %61 = vsyncpa [#allocation5], 1 }

</bundles_post_ra>
